<compile_context>
chip_gen: v5e
topology: v5e:2x2
jax: 0.10.0
libtpu: 0.0.40
codegen_flags: <defaults>
</compile_context>

<pallas_src>
import numpy as np
import jax
import jax.numpy as jnp
from jax import lax
from jax.experimental import pallas as pl
from jax.experimental.pallas import tpu as pltpu


def evinet_kernel(x_ref, w1_ref, b1_ref, sw1_ref, w2t_ref, b2_ref, sw2_ref,
                  mu_out_ref, sig_out_ref):
    f32 = jnp.float32
    x = x_ref[...].astype(f32)      # [TB, F] (cast in-register; free if f32)
    w1 = w1_ref[...]                # [F, N]
    b1 = b1_ref[...]                # [1, N]
    sw1 = sw1_ref[...]              # [1, N]  per-output weight variance, layer 1
    w2t = w2t_ref[...]              # [2, N]  W2^T (transposed once in wrapper)
    b2 = b2_ref[...]                # [1, 2]
    sw2 = sw2_ref[...]              # [1, 2]  per-output weight variance, layer 2
    TB = x.shape[0]

    # ---- EVI_FullyConnected #1 (input_flag=True: deterministic input) ----
    mu1 = jnp.dot(x, w1, preferred_element_type=f32) + b1        # [TB, N] (MXU)
    xsq = jnp.sum(x * x, axis=-1, keepdims=True)                 # [TB, 1]
    sig1_diag = xsq * sw1                                        # [TB, N]

    # ---- EVI_Relu (first-order): covariance stays diagonal ----
    pos = mu1 > 0
    mu1r = jnp.where(pos, mu1, 0.0)                              # [TB, N]
    d = jnp.where(pos, sig1_diag, 0.0)                           # diag(Sigma)

    # ---- EVI_FullyConnected #2 (O=2): closed-form VPU lane reductions ----
    w2_0 = w2t[0:1, :]                                           # [1, N]
    w2_1 = w2t[1:2, :]                                           # [1, N]
    mu2_0 = jnp.sum(mu1r * w2_0, axis=-1, keepdims=True) + b2[:, 0:1]   # [TB,1]
    mu2_1 = jnp.sum(mu1r * w2_1, axis=-1, keepdims=True) + b2[:, 1:2]
    # sig2 = W2^T diag(d) W2  (symmetric -> 3 unique entries)
    s00 = jnp.sum(d * (w2_0 * w2_0), axis=-1, keepdims=True)            # [TB,1]
    s01 = jnp.sum(d * (w2_0 * w2_1), axis=-1, keepdims=True)
    s11 = jnp.sum(d * (w2_1 * w2_1), axis=-1, keepdims=True)
    # Extra diagonal term: (tr(Sigma_in) + ||mu||^2) * sigma_w2
    extra = jnp.sum(d + mu1r * mu1r, axis=-1, keepdims=True)            # [TB,1]
    s00 = s00 + extra * sw2[:, 0:1]
    s11 = s11 + extra * sw2[:, 1:2]

    # ---- EVI_Softmax(dim=1), O=2 closed form ----
    # p = softmax(mu2); J = diag(p) - p p^T = p0*p1*[[1,-1],[-1,1]]
    # => sig3 = J sig2 J^T = (p0*p1)^2 * (s00 - 2*s01 + s11) * [[1,-1],[-1,1]]
    m = jnp.maximum(mu2_0, mu2_1)
    e0 = jnp.exp(mu2_0 - m)
    e1 = jnp.exp(mu2_1 - m)
    inv = 1.0 / (e0 + e1)
    p0 = e0 * inv                                                # [TB,1]
    p1 = e1 * inv
    pp = p0 * p1
    q = pp * pp * (s00 - 2.0 * s01 + s11)                        # [TB,1]

    # Assemble lane-packed outputs with broadcast+select (no concat/einsum).
    col2 = lax.broadcasted_iota(jnp.int32, (TB, 2), 1)
    mu_out_ref[...] = jnp.where(col2 == 0, p0, p1)               # [TB, 2]
    col4 = lax.broadcasted_iota(jnp.int32, (TB, 4), 1)
    sign = jnp.where((col4 == 0) | (col4 == 3), 1.0, -1.0)       # [1,-1,-1,1]
    sig_out_ref[...] = sign * q                                  # [TB, 4]


def evinet_forward(x, w1, b1, sw1, w2, b2, sw2, *, tile_b=512):
    B = x.shape[0]
    flat = x.reshape(B, -1)                       # torch.flatten(x, start_dim=1)
    F = flat.shape[1]
    N = w1.shape[1]
    O = w2.shape[1]
    assert O == 2, "kernel is specialized for the module's out_features=2"

    f32 = jnp.float32
    w1 = w1.astype(f32)
    b1 = b1.astype(f32)
    sw1 = sw1.astype(f32)
    b2 = b2.astype(f32)
    sw2 = sw2.astype(f32)
    w2t = jnp.swapaxes(w2, 0, 1).astype(f32)      # transpose once, outside kernel

    # --- batch tile selection ---
    # Cap TB so a double-buffered f32 x tile stays <= ~24 MiB (v7x VMEM = 64 MiB).
    tb_cap = max(8, ((24 * 1024 * 1024) // (2 * 4 * F)) // 8 * 8)
    eff_tile = min(tile_b, tb_cap)
    if B <= eff_tile:
        TB = B                                    # block == full dim (always legal)
    else:
        tb = eff_tile
        # keep >= 4 grid steps for pipelining when B allows
        while tb > 8 and pl.cdiv(B, tb) < 4:
            tb //= 2
        TB = max(8, (tb // 8) * 8)
    grid = (pl.cdiv(B, TB),)

    # --- VMEM budget: 2x-buffered x + weights + intermediates + slack ---
    vmem_need = 4 * (2 * TB * F + 2 * F * N + 2 * TB * (O + O * O)
                     + 16 * TB * N + 8 * (N + O))
    vmem_limit = int(max(vmem_need + (4 << 20), 16 << 20))

    flops = 2 * B * F * N + 2 * B * F + 14 * B * N + 40 * B
    bytes_accessed = flat.dtype.itemsize * B * F + 4 * (
        F * N + 4 * N + 3 * O + B * O + B * O * O)
    cost = pl.CostEstimate(flops=flops, transcendentals=2 * B,
                           bytes_accessed=bytes_accessed)

    mu, sig_flat = pl.pallas_call(
        evinet_kernel,
        out_shape=(jax.ShapeDtypeStruct((B, O), f32),
                   jax.ShapeDtypeStruct((B, O * O), f32)),
        grid=grid,
        in_specs=[
            pl.BlockSpec((TB, F), lambda i: (i, 0)),   # x tile (pipelined DMA)
            pl.BlockSpec((F, N), lambda i: (0, 0)),    # w1 (VMEM-resident)
            pl.BlockSpec((1, N), lambda i: (0, 0)),    # b1
            pl.BlockSpec((1, N), lambda i: (0, 0)),    # sw1
            pl.BlockSpec((O, N), lambda i: (0, 0)),    # w2^T
            pl.BlockSpec((1, O), lambda i: (0, 0)),    # b2
            pl.BlockSpec((1, O), lambda i: (0, 0)),    # sw2
        ],
        out_specs=(pl.BlockSpec((TB, O), lambda i: (i, 0)),
                   pl.BlockSpec((TB, O * O), lambda i: (i, 0))),
        compiler_params=pltpu.CompilerParams(
            dimension_semantics=("parallel",),
            vmem_limit_bytes=vmem_limit),
        cost_estimate=cost,
    )(flat, w1, b1, sw1, w2t, b2, sw2)
    return mu, sig_flat.reshape(B, O, O)


def ref_forward(flat, w1, b1, sw1, w2, b2, sw2):
    """Pure-JAX reference of the same moment-propagation math."""
    O = w2.shape[1]
    mu1 = flat @ w1 + b1
    sig1_diag = jnp.sum(flat * flat, -1, keepdims=True) * sw1
    grad = (mu1 > 0).astype(jnp.float32)
    mu1r = jnp.maximum(mu1, 0.0)
    d = sig1_diag * grad
    mu2 = mu1r @ w2 + b2
    sig2 = jnp.einsum('nk,bn,no->bko', w2, d, w2)
    extra = (jnp.sum(d, -1) + jnp.sum(mu1r * mu1r, -1))[:, None] * sw2
    sig2 = sig2 + extra[:, :, None] * jnp.eye(O)[None]
    p = jax.nn.softmax(mu2, axis=-1)
    J = p[:, :, None] * jnp.eye(O)[None] - p[:, :, None] * p[:, None, :]
    sig3 = jnp.einsum('bij,bjk,blk->bil', J, sig2, J)
    return p, sig3


if __name__ == "__main__":
    key = jax.random.PRNGKey(0)
    B, C, H, W = 2, 4, 16, 16
    n_feats = C * H * W           # 1024
    num_nodes = 32
    out_features = 2

    ks = jax.random.split(key, 3)
    x = jax.random.normal(ks[0], (B, C, H, W), jnp.float32)

    # Deterministic synthetic parameters (shapes from EVI_FullyConnected(n_feats,
    # num_nodes) and EVI_FullyConnected(num_nodes, 2)); weight variances positive.
    w1 = jax.random.normal(ks[1], (n_feats, num_nodes), jnp.float32) / jnp.sqrt(
        jnp.float32(n_feats))
    b1 = (0.01 * jnp.arange(num_nodes, dtype=jnp.float32)).reshape(1, num_nodes)
    sw1 = (0.02 + 0.001 * jnp.arange(num_nodes, dtype=jnp.float32)).reshape(1, num_nodes)
    w2 = jax.random.normal(ks[2], (num_nodes, out_features), jnp.float32) / jnp.sqrt(
        jnp.float32(num_nodes))
    b2 = (0.01 * jnp.arange(out_features, dtype=jnp.float32)).reshape(1, out_features)
    sw2 = (0.03 + 0.001 * jnp.arange(out_features, dtype=jnp.float32)).reshape(
        1, out_features)

    mu, sigma = evinet_forward(x, w1, b1, sw1, w2, b2, sw2)
    jax.block_until_ready((mu, sigma))

    mu_ref, sig_ref = ref_forward(x.reshape(B, -1), w1, b1, sw1, w2, b2, sw2)
    assert mu.shape == (B, out_features) and sigma.shape == (B, out_features, out_features)
    assert np.allclose(np.asarray(mu), np.asarray(mu_ref), rtol=1e-4, atol=1e-5)
    assert np.allclose(np.asarray(sigma), np.asarray(sig_ref), rtol=1e-4, atol=1e-5)
    print("KERNEL_OK")
</pallas_src>

<mosaic_0001>
module attributes {stable_mosaic.version = 11 : i64} {
  func.func @evinet_kernel(%arg0: i32, %arg1: memref<2x1024xf32, #tpu.memory_space<vmem>>, %arg2: memref<1024x32xf32, #tpu.memory_space<vmem>>, %arg3: memref<1x32xf32, #tpu.memory_space<vmem>>, %arg4: memref<1x32xf32, #tpu.memory_space<vmem>>, %arg5: memref<2x32xf32, #tpu.memory_space<vmem>>, %arg6: memref<1x2xf32, #tpu.memory_space<vmem>>, %arg7: memref<1x2xf32, #tpu.memory_space<vmem>>, %arg8: memref<2x2xf32, #tpu.memory_space<vmem>>, %arg9: memref<2x4xf32, #tpu.memory_space<vmem>>) attributes {dimension_semantics = [#tpu.dimension_semantics<parallel>], iteration_bounds = array<i64: 1>, scalar_prefetch = 0 : i64, scratch_operands = 0 : i64, tpu.core_type = #tpu.core_type<tc>, window_params = [{transform_indices = @transform_0, window_bounds = array<i64: 2, 1024>}, {pipeline_mode = #tpu.pipeline_mode<synchronous>, transform_indices = @transform_1, window_bounds = array<i64: 1024, 32>}, {pipeline_mode = #tpu.pipeline_mode<synchronous>, transform_indices = @transform_2, window_bounds = array<i64: 1, 32>}, {pipeline_mode = #tpu.pipeline_mode<synchronous>, transform_indices = @transform_3, window_bounds = array<i64: 1, 32>}, {pipeline_mode = #tpu.pipeline_mode<synchronous>, transform_indices = @transform_4, window_bounds = array<i64: 2, 32>}, {pipeline_mode = #tpu.pipeline_mode<synchronous>, transform_indices = @transform_5, window_bounds = array<i64: 1, 2>}, {pipeline_mode = #tpu.pipeline_mode<synchronous>, transform_indices = @transform_6, window_bounds = array<i64: 1, 2>}, {transform_indices = @transform_7, window_bounds = array<i64: 2, 2>}, {transform_indices = @transform_8, window_bounds = array<i64: 2, 4>}]} {
    %c0 = arith.constant 0 : index
    %c0_0 = arith.constant 0 : index
    %0 = vector.load %arg1[%c0, %c0_0] : memref<2x1024xf32, #tpu.memory_space<vmem>>, vector<2x1024xf32>
    %c0_1 = arith.constant 0 : index
    %c0_2 = arith.constant 0 : index
    %1 = vector.load %arg2[%c0_1, %c0_2] : memref<1024x32xf32, #tpu.memory_space<vmem>>, vector<1024x32xf32>
    %c0_3 = arith.constant 0 : index
    %c0_4 = arith.constant 0 : index
    %2 = vector.load %arg3[%c0_3, %c0_4] : memref<1x32xf32, #tpu.memory_space<vmem>>, vector<1x32xf32>
    %c0_5 = arith.constant 0 : index
    %c0_6 = arith.constant 0 : index
    %3 = vector.load %arg4[%c0_5, %c0_6] : memref<1x32xf32, #tpu.memory_space<vmem>>, vector<1x32xf32>
    %c0_7 = arith.constant 0 : index
    %c0_8 = arith.constant 0 : index
    %4 = vector.load %arg5[%c0_7, %c0_8] : memref<2x32xf32, #tpu.memory_space<vmem>>, vector<2x32xf32>
    %c0_9 = arith.constant 0 : index
    %c0_10 = arith.constant 0 : index
    %5 = vector.load %arg6[%c0_9, %c0_10] : memref<1x2xf32, #tpu.memory_space<vmem>>, vector<1x2xf32>
    %c0_11 = arith.constant 0 : index
    %c0_12 = arith.constant 0 : index
    %6 = vector.load %arg7[%c0_11, %c0_12] : memref<1x2xf32, #tpu.memory_space<vmem>>, vector<1x2xf32>
    %cst = arith.constant dense<0.000000e+00> : vector<2x32xf32>
    %7 = tpu.matmul %0, %1, %cst {dimension_numbers = #tpu.dot_dimension_numbers<[1], [0], [0], [1], [0, 0, 1, 1], [], []>} : vector<2x1024xf32>, vector<1024x32xf32>, vector<2x32xf32> -> vector<2x32xf32>
    %8 = vector.broadcast %2 : vector<1x32xf32> to vector<2x32xf32>
    %9 = arith.addf %7, %8 : vector<2x32xf32>
    %10 = arith.mulf %0, %0 : vector<2x1024xf32>
    %cst_13 = arith.constant dense<0.000000e+00> : vector<2xf32>
    %11 = vector.multi_reduction <add>, %10, %cst_13 [1] : vector<2x1024xf32> to vector<2xf32>
    %12 = vector.shape_cast %11 : vector<2xf32> to vector<2x1xf32>
    %13 = vector.broadcast %12 : vector<2x1xf32> to vector<2x32xf32>
    %14 = vector.broadcast %3 : vector<1x32xf32> to vector<2x32xf32>
    %15 = arith.mulf %13, %14 : vector<2x32xf32>
    %cst_14 = arith.constant 0.000000e+00 : f32
    %16 = vector.broadcast %cst_14 : f32 to vector<2x32xf32>
    %17 = arith.cmpf ogt, %9, %16 : vector<2x32xf32>
    %cst_15 = arith.constant 0.000000e+00 : f32
    %18 = vector.broadcast %cst_15 : f32 to vector<2x32xf32>
    %19 = arith.select %17, %9, %18 : vector<2x32xi1>, vector<2x32xf32>
    %cst_16 = arith.constant 0.000000e+00 : f32
    %20 = vector.broadcast %cst_16 : f32 to vector<2x32xf32>
    %21 = arith.select %17, %15, %20 : vector<2x32xi1>, vector<2x32xf32>
    %22 = vector.extract_strided_slice %4 {offsets = [0, 0], sizes = [1, 32], strides = [1, 1]} : vector<2x32xf32> to vector<1x32xf32>
    %23 = vector.extract_strided_slice %4 {offsets = [1, 0], sizes = [1, 32], strides = [1, 1]} : vector<2x32xf32> to vector<1x32xf32>
    %24 = vector.broadcast %22 : vector<1x32xf32> to vector<2x32xf32>
    %25 = arith.mulf %19, %24 : vector<2x32xf32>
    %cst_17 = arith.constant dense<0.000000e+00> : vector<2xf32>
    %26 = vector.multi_reduction <add>, %25, %cst_17 [1] : vector<2x32xf32> to vector<2xf32>
    %27 = vector.shape_cast %26 : vector<2xf32> to vector<2x1xf32>
    %28 = vector.extract_strided_slice %5 {offsets = [0, 0], sizes = [1, 1], strides = [1, 1]} : vector<1x2xf32> to vector<1x1xf32>
    %29 = vector.broadcast %28 : vector<1x1xf32> to vector<2x1xf32>
    %30 = arith.addf %27, %29 : vector<2x1xf32>
    %31 = vector.broadcast %23 : vector<1x32xf32> to vector<2x32xf32>
    %32 = arith.mulf %19, %31 : vector<2x32xf32>
    %cst_18 = arith.constant dense<0.000000e+00> : vector<2xf32>
    %33 = vector.multi_reduction <add>, %32, %cst_18 [1] : vector<2x32xf32> to vector<2xf32>
    %34 = vector.shape_cast %33 : vector<2xf32> to vector<2x1xf32>
    %35 = vector.extract_strided_slice %5 {offsets = [0, 1], sizes = [1, 1], strides = [1, 1]} : vector<1x2xf32> to vector<1x1xf32>
    %36 = vector.broadcast %35 : vector<1x1xf32> to vector<2x1xf32>
    %37 = arith.addf %34, %36 : vector<2x1xf32>
    %38 = arith.mulf %22, %22 : vector<1x32xf32>
    %39 = vector.broadcast %38 : vector<1x32xf32> to vector<2x32xf32>
    %40 = arith.mulf %21, %39 : vector<2x32xf32>
    %cst_19 = arith.constant dense<0.000000e+00> : vector<2xf32>
    %41 = vector.multi_reduction <add>, %40, %cst_19 [1] : vector<2x32xf32> to vector<2xf32>
    %42 = vector.shape_cast %41 : vector<2xf32> to vector<2x1xf32>
    %43 = arith.mulf %22, %23 : vector<1x32xf32>
    %44 = vector.broadcast %43 : vector<1x32xf32> to vector<2x32xf32>
    %45 = arith.mulf %21, %44 : vector<2x32xf32>
    %cst_20 = arith.constant dense<0.000000e+00> : vector<2xf32>
    %46 = vector.multi_reduction <add>, %45, %cst_20 [1] : vector<2x32xf32> to vector<2xf32>
    %47 = vector.shape_cast %46 : vector<2xf32> to vector<2x1xf32>
    %48 = arith.mulf %23, %23 : vector<1x32xf32>
    %49 = vector.broadcast %48 : vector<1x32xf32> to vector<2x32xf32>
    %50 = arith.mulf %21, %49 : vector<2x32xf32>
    %cst_21 = arith.constant dense<0.000000e+00> : vector<2xf32>
    %51 = vector.multi_reduction <add>, %50, %cst_21 [1] : vector<2x32xf32> to vector<2xf32>
    %52 = vector.shape_cast %51 : vector<2xf32> to vector<2x1xf32>
    %53 = arith.mulf %19, %19 : vector<2x32xf32>
    %54 = arith.addf %21, %53 : vector<2x32xf32>
    %cst_22 = arith.constant dense<0.000000e+00> : vector<2xf32>
    %55 = vector.multi_reduction <add>, %54, %cst_22 [1] : vector<2x32xf32> to vector<2xf32>
    %56 = vector.shape_cast %55 : vector<2xf32> to vector<2x1xf32>
    %57 = vector.extract_strided_slice %6 {offsets = [0, 0], sizes = [1, 1], strides = [1, 1]} : vector<1x2xf32> to vector<1x1xf32>
    %58 = vector.broadcast %57 : vector<1x1xf32> to vector<2x1xf32>
    %59 = arith.mulf %56, %58 : vector<2x1xf32>
    %60 = arith.addf %42, %59 : vector<2x1xf32>
    %61 = vector.extract_strided_slice %6 {offsets = [0, 1], sizes = [1, 1], strides = [1, 1]} : vector<1x2xf32> to vector<1x1xf32>
    %62 = vector.broadcast %61 : vector<1x1xf32> to vector<2x1xf32>
    %63 = arith.mulf %56, %62 : vector<2x1xf32>
    %64 = arith.addf %52, %63 : vector<2x1xf32>
    %65 = arith.maximumf %30, %37 : vector<2x1xf32>
    %66 = arith.subf %30, %65 : vector<2x1xf32>
    %67 = math.exp %66 : vector<2x1xf32>
    %68 = arith.subf %37, %65 : vector<2x1xf32>
    %69 = math.exp %68 : vector<2x1xf32>
    %70 = arith.addf %67, %69 : vector<2x1xf32>
    %cst_23 = arith.constant 1.000000e+00 : f32
    %71 = vector.broadcast %cst_23 : f32 to vector<2x1xf32>
    %72 = arith.divf %71, %70 : vector<2x1xf32>
    %73 = arith.mulf %67, %72 : vector<2x1xf32>
    %74 = arith.mulf %69, %72 : vector<2x1xf32>
    %75 = arith.mulf %73, %74 : vector<2x1xf32>
    %76 = arith.mulf %75, %75 : vector<2x1xf32>
    %cst_24 = arith.constant 2.000000e+00 : f32
    %77 = vector.broadcast %cst_24 : f32 to vector<2x1xf32>
    %78 = arith.mulf %77, %47 : vector<2x1xf32>
    %79 = arith.subf %60, %78 : vector<2x1xf32>
    %80 = arith.addf %79, %64 : vector<2x1xf32>
    %81 = arith.mulf %76, %80 : vector<2x1xf32>
    %82 = tpu.iota {dimensions = array<i32: 1>} : vector<2x2xi32>
    %c0_i32 = arith.constant 0 : i32
    %83 = vector.broadcast %c0_i32 : i32 to vector<2x2xi32>
    %84 = arith.cmpi eq, %82, %83 : vector<2x2xi32>
    %85 = vector.shape_cast %73 : vector<2x1xf32> to vector<2x1xf32>
    %86 = vector.broadcast %85 : vector<2x1xf32> to vector<2x2xf32>
    %87 = vector.shape_cast %74 : vector<2x1xf32> to vector<2x1xf32>
    %88 = vector.broadcast %87 : vector<2x1xf32> to vector<2x2xf32>
    %89 = arith.select %84, %86, %88 : vector<2x2xi1>, vector<2x2xf32>
    %c0_25 = arith.constant 0 : index
    %c0_26 = arith.constant 0 : index
    %90 = vector.load %arg8[%c0_25, %c0_26] : memref<2x2xf32, #tpu.memory_space<vmem>>, vector<2x2xf32>
    tpu.vector_store %arg8[%c0_25, %c0_26], %89 {strides = array<i32>} : memref<2x2xf32, #tpu.memory_space<vmem>>, vector<2x2xf32>,
    %91 = tpu.iota {dimensions = array<i32: 1>} : vector<2x4xi32>
    %c0_i32_27 = arith.constant 0 : i32
    %92 = vector.broadcast %c0_i32_27 : i32 to vector<2x4xi32>
    %93 = arith.cmpi eq, %91, %92 : vector<2x4xi32>
    %c3_i32 = arith.constant 3 : i32
    %94 = vector.broadcast %c3_i32 : i32 to vector<2x4xi32>
    %95 = arith.cmpi eq, %91, %94 : vector<2x4xi32>
    %96 = arith.ori %93, %95 : vector<2x4xi1>
    %cst_28 = arith.constant 1.000000e+00 : f32
    %cst_29 = arith.constant -1.000000e+00 : f32
    %97 = vector.broadcast %cst_28 : f32 to vector<2x4xf32>
    %98 = vector.broadcast %cst_29 : f32 to vector<2x4xf32>
    %99 = arith.select %96, %97, %98 : vector<2x4xi1>, vector<2x4xf32>
    %100 = vector.broadcast %81 : vector<2x1xf32> to vector<2x4xf32>
    %101 = arith.mulf %99, %100 : vector<2x4xf32>
    %c0_30 = arith.constant 0 : index
    %c0_31 = arith.constant 0 : index
    %102 = vector.load %arg9[%c0_30, %c0_31] : memref<2x4xf32, #tpu.memory_space<vmem>>, vector<2x4xf32>
    tpu.vector_store %arg9[%c0_30, %c0_31], %101 {strides = array<i32>} : memref<2x4xf32, #tpu.memory_space<vmem>>, vector<2x4xf32>,
    return
  }
  func.func @transform_0(%arg0: i32) -> (i32, i32) {
    %c0_i32 = arith.constant 0 : i32
    %c0_i32_0 = arith.constant 0 : i32
    return %arg0, %c0_i32 : i32, i32
  }
  func.func @transform_1(%arg0: i32) -> (i32, i32) {
    %c0_i32 = arith.constant 0 : i32
    %c0_i32_0 = arith.constant 0 : i32
    %c0_i32_1 = arith.constant 0 : i32
    return %c0_i32, %c0_i32_0 : i32, i32
  }
  func.func @transform_2(%arg0: i32) -> (i32, i32) {
    %c0_i32 = arith.constant 0 : i32
    %c0_i32_0 = arith.constant 0 : i32
    %c0_i32_1 = arith.constant 0 : i32
    return %c0_i32, %c0_i32_0 : i32, i32
  }
  func.func @transform_3(%arg0: i32) -> (i32, i32) {
    %c0_i32 = arith.constant 0 : i32
    %c0_i32_0 = arith.constant 0 : i32
    %c0_i32_1 = arith.constant 0 : i32
    return %c0_i32, %c0_i32_0 : i32, i32
  }
  func.func @transform_4(%arg0: i32) -> (i32, i32) {
    %c0_i32 = arith.constant 0 : i32
    %c0_i32_0 = arith.constant 0 : i32
    %c0_i32_1 = arith.constant 0 : i32
    return %c0_i32, %c0_i32_0 : i32, i32
  }
  func.func @transform_5(%arg0: i32) -> (i32, i32) {
    %c0_i32 = arith.constant 0 : i32
    %c0_i32_0 = arith.constant 0 : i32
    %c0_i32_1 = arith.constant 0 : i32
    return %c0_i32, %c0_i32_0 : i32, i32
  }
  func.func @transform_6(%arg0: i32) -> (i32, i32) {
    %c0_i32 = arith.constant 0 : i32
    %c0_i32_0 = arith.constant 0 : i32
    %c0_i32_1 = arith.constant 0 : i32
    return %c0_i32, %c0_i32_0 : i32, i32
  }
  func.func @transform_7(%arg0: i32) -> (i32, i32) {
    %c0_i32 = arith.constant 0 : i32
    %c0_i32_0 = arith.constant 0 : i32
    return %arg0, %c0_i32 : i32, i32
  }
  func.func @transform_8(%arg0: i32) -> (i32, i32) {
    %c0_i32 = arith.constant 0 : i32
    %c0_i32_0 = arith.constant 0 : i32
    return %arg0, %c0_i32 : i32, i32
  }
}

</mosaic_0001>

<bundles_post_ra>
// kernel: tpu_custom_call.1
= control target key start
LH: loop header
LB: loop body
LE: loop exit
PB: predicated region body
PF: predicated region fallthrough
CT: control target
= control target key end

     0   :  { %14 = vsyncpa [#allocation3], 0  ;;  %s1146_s0 = inlined_call_operand.vmem [shape: f32[2,1024], index: 0, kind: input, shape index: {}]   ;;  %s1147_s1 = inlined_call_operand.vmem [shape: f32[1024,32], index: 1, kind: input, shape index: {}]   ;;  %s1148_s2 = inlined_call_operand.vmem [shape: f32[1,32], index: 2, kind: input, shape index: {}]   ;;  %s1149_s3 = inlined_call_operand.vmem [shape: f32[1,32], index: 3, kind: input, shape index: {}]   ;;  %s1150_s4 = inlined_call_operand.vmem [shape: f32[2,32], index: 4, kind: input, shape index: {}]   ;;  %s1151_s5 = inlined_call_operand.vmem [shape: f32[1,2], index: 5, kind: input, shape index: {}]   ;;  %s1152_s6 = inlined_call_operand.vmem [shape: f32[1,2], index: 6, kind: input, shape index: {}]   ;;  %s1153_s7 = inlined_call_operand.hbm [shape: f32[2,2], index: 7, kind: output, shape index: {0}]   ;;  %s1154_s8 = inlined_call_operand.hbm [shape: f32[2,4], index: 8, kind: output, shape index: {1}]  }
   0x1   :  { %v79_v0 = vld [vmem:[%s1147_s1 + $0x178] sm:$0xff]  ;;  %v78_v2 = vld [vmem:[%s1147_s1 + $0x170] sm:$0xff]  ;;  %v77_v6 = vld [vmem:[%s1147_s1 + $0x168] sm:$0xff] }
   0x2   :  { %v47_v1 = vld [vmem:[%s1147_s1 + $0x78] sm:$0xff]  ;;  %229 = vmatpush.msra.mxu2 %v79_v0  ;;  %v46_v4 = vld [vmem:[%s1147_s1 + $0x70] sm:$0xff]  ;;  %v45_v8 = vld [vmem:[%s1147_s1 + $0x68] sm:$0xff] }
   0x3   :  { %189 = vmatpush.msra.mxu0 %v47_v1  ;;  %v95_v3 = vld [vmem:[%s1147_s1 + $0x1f8] sm:$0xff]  ;;  %v94_v7 = vld [vmem:[%s1147_s1 + $0x1f0] sm:$0xff]  ;;  %v93_v10 = vld [vmem:[%s1147_s1 + $0x1e8] sm:$0xff] }
   0x4   :  { %v63_v5 = vld [vmem:[%s1147_s1 + $0xf8] sm:$0xff]  ;;  %249 = vmatpush.msra.mxu3 %v95_v3  ;;  %230 = vmatpush.msra.mxu2 %v78_v2  ;;  %v62_v9 = vld [vmem:[%s1147_s1 + $0xf0] sm:$0xff]  ;;  %v76_v11 = vld [vmem:[%s1147_s1 + $0x160] sm:$0xff] }
   0x5   :  { %209 = vmatpush.msra.mxu1 %v63_v5  ;;  %190 = vmatpush.msra.mxu0 %v46_v4  ;;  %v44_v12 = vld [vmem:[%s1147_s1 + $0x60] sm:$0xff]  ;;  %v61_v13 = vld [vmem:[%s1147_s1 + $0xe8] sm:$0xff]  ;;  %v75_v16 = vld [vmem:[%s1147_s1 + $0x158] sm:$0xff] }
   0x6   :  { %250 = vmatpush.msra.mxu3 %v94_v7  ;;  %231 = vmatpush.msra.mxu2 %v77_v6  ;;  %v92_v14 = vld [vmem:[%s1147_s1 + $0x1e0] sm:$0xff]  ;;  %v43_v17 = vld [vmem:[%s1147_s1 + $0x58] sm:$0xff]  ;;  %v74_v20 = vld [vmem:[%s1147_s1 + $0x150] sm:$0xff] }
   0x7   :  { %210 = vmatpush.msra.mxu1 %v62_v9  ;;  %191 = vmatpush.msra.mxu0 %v45_v8  ;;  %v60_v15 = vld [vmem:[%s1147_s1 + $0xe0] sm:$0xff]  ;;  %v91_v18 = vld [vmem:[%s1147_s1 + $0x1d8] sm:$0xff]  ;;  %v42_v21 = vld [vmem:[%s1147_s1 + $0x50] sm:$0xff] }
   0x8   :  { %251 = vmatpush.msra.mxu3 %v93_v10  ;;  %232 = vmatpush.msra.mxu2 %v76_v11  ;;  %v59_v19 = vld [vmem:[%s1147_s1 + $0xd8] sm:$0xff]  ;;  %v90_v22 = vld [vmem:[%s1147_s1 + $0x1d0] sm:$0xff]  ;;  %v73_v24 = vld [vmem:[%s1147_s1 + $0x148] sm:$0xff] }
   0x9   :  { %211 = vmatpush.msra.mxu1 %v61_v13  ;;  %192 = vmatpush.msra.mxu0 %v44_v12  ;;  %v58_v23 = vld [vmem:[%s1147_s1 + $0xd0] sm:$0xff]  ;;  %v41_v25 = vld [vmem:[%s1147_s1 + $0x48] sm:$0xff]  ;;  %v72_v28 = vld [vmem:[%s1147_s1 + $0x140] sm:$0xff] }
   0xa   :  { %252 = vmatpush.msra.mxu3 %v92_v14  ;;  %233 = vmatpush.msra.mxu2 %v75_v16  ;;  %v89_v26 = vld [vmem:[%s1147_s1 + $0x1c8] sm:$0xff]  ;;  %v40_v29 = vld [vmem:[%s1147_s1 + $0x40] sm:$0xff]  ;;  %v71_v32 = vld [vmem:[%s1147_s1 + $0x138] sm:$0xff] }
   0xb   :  { %212 = vmatpush.msra.mxu1 %v60_v15  ;;  %193 = vmatpush.msra.mxu0 %v43_v17  ;;  %v57_v27 = vld [vmem:[%s1147_s1 + $0xc8] sm:$0xff]  ;;  %v88_v30 = vld [vmem:[%s1147_s1 + $0x1c0] sm:$0xff]  ;;  %v39_v33 = vld [vmem:[%s1147_s1 + $0x38] sm:$0xff] }
   0xc   :  { %253 = vmatpush.msra.mxu3 %v91_v18  ;;  %234 = vmatpush.msra.mxu2 %v74_v20  ;;  %v56_v31 = vld [vmem:[%s1147_s1 + $0xc0] sm:$0xff]  ;;  %v87_v34 = vld [vmem:[%s1147_s1 + $0x1b8] sm:$0xff]  ;;  %v70_v36 = vld [vmem:[%s1147_s1 + $0x130] sm:$0xff] }
   0xd   :  { %213 = vmatpush.msra.mxu1 %v59_v19  ;;  %194 = vmatpush.msra.mxu0 %v42_v21  ;;  %v55_v35 = vld [vmem:[%s1147_s1 + $0xb8] sm:$0xff]  ;;  %v38_v37 = vld [vmem:[%s1147_s1 + $0x30] sm:$0xff]  ;;  %v69_v40 = vld [vmem:[%s1147_s1 + $0x128] sm:$0xff] }
   0xe   :  { %254 = vmatpush.msra.mxu3 %v90_v22  ;;  %235 = vmatpush.msra.mxu2 %v73_v24  ;;  %v86_v38 = vld [vmem:[%s1147_s1 + $0x1b0] sm:$0xff]  ;;  %v37_v41 = vld [vmem:[%s1147_s1 + $0x28] sm:$0xff]  ;;  %v68_v44 = vld [vmem:[%s1147_s1 + $0x120] sm:$0xff] }
   0xf   :  { %214 = vmatpush.msra.mxu1 %v58_v23  ;;  %195 = vmatpush.msra.mxu0 %v41_v25  ;;  %v54_v39 = vld [vmem:[%s1147_s1 + $0xb0] sm:$0xff]  ;;  %v85_v42 = vld [vmem:[%s1147_s1 + $0x1a8] sm:$0xff]  ;;  %v36_v45 = vld [vmem:[%s1147_s1 + $0x20] sm:$0xff] }
  0x10   :  { %255 = vmatpush.msra.mxu3 %v89_v26  ;;  %236 = vmatpush.msra.mxu2 %v72_v28  ;;  %v53_v43 = vld [vmem:[%s1147_s1 + $0xa8] sm:$0xff]  ;;  %v84_v46 = vld [vmem:[%s1147_s1 + $0x1a0] sm:$0xff]  ;;  %v67_v48 = vld [vmem:[%s1147_s1 + $0x118] sm:$0xff] }
  0x11   :  { %215 = vmatpush.msra.mxu1 %v57_v27  ;;  %196 = vmatpush.msra.mxu0 %v40_v29  ;;  %v52_v47 = vld [vmem:[%s1147_s1 + $0xa0] sm:$0xff]  ;;  %v35_v49 = vld [vmem:[%s1147_s1 + $0x18] sm:$0xff]  ;;  %v66_v52 = vld [vmem:[%s1147_s1 + $0x110] sm:$0xff] }
  0x12   :  { %256 = vmatpush.msra.mxu3 %v88_v30  ;;  %237 = vmatpush.msra.mxu2 %v71_v32  ;;  %v83_v50 = vld [vmem:[%s1147_s1 + $0x198] sm:$0xff]  ;;  %v34_v53 = vld [vmem:[%s1147_s1 + $0x10] sm:$0xff]  ;;  %v65_v56 = vld [vmem:[%s1147_s1 + $0x108] sm:$0xff] }
  0x13   :  { %216 = vmatpush.msra.mxu1 %v56_v31  ;;  %197 = vmatpush.msra.mxu0 %v39_v33  ;;  %v51_v51 = vld [vmem:[%s1147_s1 + $0x98] sm:$0xff]  ;;  %v82_v54 = vld [vmem:[%s1147_s1 + $0x190] sm:$0xff]  ;;  %v33_v57 = vld [vmem:[%s1147_s1 + $0x8] sm:$0xff] }
  0x14   :  { %257 = vmatpush.msra.mxu3 %v87_v34  ;;  %238 = vmatpush.msra.mxu2 %v70_v36  ;;  %v50_v55 = vld [vmem:[%s1147_s1 + $0x90] sm:$0xff]  ;;  %v81_v58 = vld [vmem:[%s1147_s1 + $0x188] sm:$0xff]  ;;  %v64_v60 = vld [vmem:[%s1147_s1 + $0x100] sm:$0xff] }
  0x15   :  { %217 = vmatpush.msra.mxu1 %v55_v35  ;;  %198 = vmatpush.msra.mxu0 %v38_v37  ;;  %v49_v59 = vld [vmem:[%s1147_s1 + $0x88] sm:$0xff]  ;;  %v32_v61 = vld [vmem:[%s1147_s1] sm:$0xff]  ;;  %v143_v62 = vld [vmem:[%s1147_s1 + $0x378] sm:$0xff] }
  0x16   :  { %258 = vmatpush.msra.mxu3 %v86_v38  ;;  %239 = vmatpush.msra.mxu2 %v69_v40  ;;  %v80_v63 = vld [vmem:[%s1147_s1 + $0x180] sm:$0xff]  ;;  %v111_v0 = vld [vmem:[%s1147_s1 + $0x278] sm:$0xff]  ;;  %v142_v2 = vld [vmem:[%s1147_s1 + $0x370] sm:$0xff] }
  0x17   :  { %218 = vmatpush.msra.mxu1 %v54_v39  ;;  %199 = vmatpush.msra.mxu0 %v37_v41  ;;  %v159_v1 = vld [vmem:[%s1147_s1 + $0x3f8] sm:$0xff]  ;;  %v48_v3 = vld [vmem:[%s1147_s1 + $0x80] sm:$0xff]  ;;  %v110_v4 = vld [vmem:[%s1147_s1 + $0x270] sm:$0xff] }
  0x18   :  { %259 = vmatpush.msra.mxu3 %v85_v42  ;;  %240 = vmatpush.msra.mxu2 %v68_v44  ;;  %v127_v5 = vld [vmem:[%s1147_s1 + $0x2f8] sm:$0xff]  ;;  %v141_v6 = vld [vmem:[%s1147_s1 + $0x368] sm:$0xff]  ;;  %v158_v7 = vld [vmem:[%s1147_s1 + $0x3f0] sm:$0xff] }
  0x19   :  { %219 = vmatpush.msra.mxu1 %v53_v43  ;;  %200 = vmatpush.msra.mxu0 %v36_v45  ;;  %v109_v8 = vld [vmem:[%s1147_s1 + $0x268] sm:$0xff]  ;;  %v126_v9 = vld [vmem:[%s1147_s1 + $0x2f0] sm:$0xff]  ;;  %v140_v10 = vld [vmem:[%s1147_s1 + $0x360] sm:$0xff] }
  0x1a   :  { %260 = vmatpush.msra.mxu3 %v84_v46  ;;  %241 = vmatpush.msra.mxu2 %v67_v48  ;;  %v157_v11 = vld [vmem:[%s1147_s1 + $0x3e8] sm:$0xff]  ;;  %v108_v12 = vld [vmem:[%s1147_s1 + $0x260] sm:$0xff]  ;;  %v139_v15 = vld [vmem:[%s1147_s1 + $0x358] sm:$0xff] }
  0x1b   :  { %220 = vmatpush.msra.mxu1 %v52_v47  ;;  %201 = vmatpush.msra.mxu0 %v35_v49  ;;  %v125_v13 = vld [vmem:[%s1147_s1 + $0x2e8] sm:$0xff]  ;;  %v30_v14 = vld [vmem:[%s1146_s0] sm:$0xff]  ;;  %v107_v17 = vld [vmem:[%s1147_s1 + $0x258] sm:$0xff] }
  0x1c   :  { %261 = vmatpush.msra.mxu3 %v83_v50  ;;  %242 = vmatpush.msra.mxu2 %v66_v52  ;;  %v156_v16 = vld [vmem:[%s1147_s1 + $0x3e0] sm:$0xff]  ;;  %170 = vst [vmem:[#allocation1] ss:$4 sm:$0xff] %v30_v14  ;;  %v138_v19 = vld [vmem:[%s1147_s1 + $0x350] sm:$0xff]  ;;  %v155_v20 = vld [vmem:[%s1147_s1 + $0x3d8] sm:$0xff]  ;;  %v349_v32 = vmul.f32 %v30_v14, %v30_v14 }
  0x1d   :  { %221 = vmatpush.msra.mxu1 %v51_v51  ;;  %202 = vmatpush.msra.mxu0 %v34_v53  ;;  %v124_v18 = vld [vmem:[%s1147_s1 + $0x2e0] sm:$0xff]  ;;  %v106_v21 = vld [vmem:[%s1147_s1 + $0x250] sm:$0xff]  ;;  %v123_v22 = vld [vmem:[%s1147_s1 + $0x2d8] sm:$0xff] }
  0x1e   :  { %262 = vmatpush.msra.mxu3 %v82_v54  ;;  %243 = vmatpush.msra.mxu2 %v65_v56  ;;  %v137_v23 = vld [vmem:[%s1147_s1 + $0x348] sm:$0xff]  ;;  %v154_v24 = vld [vmem:[%s1147_s1 + $0x3d0] sm:$0xff]  ;;  %v136_v27 = vld [vmem:[%s1147_s1 + $0x340] sm:$0xff] }
  0x1f   :  { %222 = vmatpush.msra.mxu1 %v50_v55  ;;  %203 = vmatpush.msra.mxu0 %v33_v57  ;;  %v105_v25 = vld [vmem:[%s1147_s1 + $0x248] sm:$0xff]  ;;  %v122_v26 = vld [vmem:[%s1147_s1 + $0x2d0] sm:$0xff]  ;;  %v104_v30 = vld [vmem:[%s1147_s1 + $0x240] sm:$0xff] }
  0x20   :  { %263 = vmatpush.msra.mxu3 %v81_v58  ;;  %244 = vmatpush.msra.mxu2 %v64_v60  ;;  %v31_v28 = vld [vmem:[%s1146_s0 + $0x8] sm:$0xff]  ;;  %v135_v33 = vld [vmem:[%s1147_s1 + $0x338] sm:$0xff]  ;;  %v152_v34 = vld [vmem:[%s1147_s1 + $0x3c0] sm:$0xff] }
  0x21   :  { %223 = vmatpush.msra.mxu1 %v49_v59  ;;  %204 = vmatpush.msra.mxu0 %v32_v61  ;;  %v153_v29 = vld [vmem:[%s1147_s1 + $0x3c8] sm:$0xff]  ;;  %172 = vst [vmem:[#allocation1 + $0x20] ss:$4 sm:$0xff] %v31_v28  ;;  %v103_v35 = vld [vmem:[%s1147_s1 + $0x238] sm:$0xff]  ;;  %v120_v36 = vld [vmem:[%s1147_s1 + $0x2c0] sm:$0xff]  ;;  %v350_v46 = vmul.f32 %v31_v28, %v31_v28 }
  0x22   :  { %309 = vmatpush.msrb.mxu2 %v143_v62  ;;  %264 = vmatpush.msra.mxu3 %v80_v63  ;;  %v121_v31 = vld [vmem:[%s1147_s1 + $0x2c8] sm:$0xff]  ;;  %v134_v39 = vld [vmem:[%s1147_s1 + $0x330] sm:$0xff]  ;;  %v151_v40 = vld [vmem:[%s1147_s1 + $0x3b8] sm:$0xff] }
  0x23   :  { %269 = vmatpush.msrb.mxu0 %v111_v0  ;;  %224 = vmatpush.msra.mxu1 %v48_v3  ;;  %v175_v37 = vld.sshfl [vmem:[#allocation1 + $0x10] sm:$0xff pattern:$0x73625140]  ;;  %v173_v38 = vld.sshfl [vmem:[#allocation1] sm:$0xff pattern:$0x73625140] }
  0x24   :  { %329 = vmatpush.msrb.mxu3 %v159_v1  ;;  %310 = vmatpush.msrb.mxu2 %v142_v2  ;;  %v176_v41 = vld.sshfl [vmem:[#allocation1 + $0x18] sm:$0xff pattern:$0x73625140]  ;;  %v174_v42 = vld.sshfl [vmem:[#allocation1 + $0x8] sm:$0xff pattern:$0x73625140] }
  0x25   :  { %270 = vmatpush.msrb.mxu0 %v110_v4  ;;  %289 = vmatpush.msrb.mxu1 %v127_v5  ;;  %v102_v43 = vld [vmem:[%s1147_s1 + $0x230] sm:$0xff]  ;;  %v119_v44 = vld [vmem:[%s1147_s1 + $0x2b8] sm:$0xff]  ;;  %353 = vst [vmem:[#allocation1] ss:$4 sm:$0xff] %v349_v32  ;;  %v133_v45 = vld [vmem:[%s1147_s1 + $0x328] sm:$0xff] }
  0x26   :  { %311 = vmatpush.msrb.mxu2 %v141_v6  ;;  %330 = vmatpush.msrb.mxu3 %v158_v7 }
  0x27   :  { %271 = vmatpush.msrb.mxu0 %v109_v8  ;;  %290 = vmatpush.msrb.mxu1 %v126_v9 }
  0x28   :  { %312 = vmatpush.msrb.mxu2 %v140_v10  ;;  %331 = vmatpush.msrb.mxu3 %v157_v11 }
  0x29   :  { %272 = vmatpush.msrb.mxu0 %v108_v12  ;;  %291 = vmatpush.msrb.mxu1 %v125_v13 }
  0x2a   :  { %313 = vmatpush.msrb.mxu2 %v139_v15  ;;  %332 = vmatpush.msrb.mxu3 %v156_v16 }
  0x2b   :  { %273 = vmatpush.msrb.mxu0 %v107_v17  ;;  %292 = vmatpush.msrb.mxu1 %v124_v18 }
  0x2c   :  { %314 = vmatpush.msrb.mxu2 %v138_v19  ;;  %333 = vmatpush.msrb.mxu3 %v155_v20 }
  0x2d   :  { %274 = vmatpush.msrb.mxu0 %v106_v21  ;;  %293 = vmatpush.msrb.mxu1 %v123_v22 }
  0x2e   :  { %315 = vmatpush.msrb.mxu2 %v137_v23  ;;  %334 = vmatpush.msrb.mxu3 %v154_v24 }
  0x2f   :  { %275 = vmatpush.msrb.mxu0 %v105_v25  ;;  %294 = vmatpush.msrb.mxu1 %v122_v26 }
  0x30   :  { %316 = vmatpush.msrb.mxu2 %v136_v27  ;;  %335 = vmatpush.msrb.mxu3 %v153_v29 }
  0x31   :  { %276 = vmatpush.msrb.mxu0 %v104_v30  ;;  %295 = vmatpush.msrb.mxu1 %v121_v31 }
  0x32   :  { %15 = vsyncpa [#allocation5], 0  ;;  %317 = vmatpush.msrb.mxu2 %v135_v33  ;;  %336 = vmatpush.msrb.mxu3 %v152_v34  ;;  %v150_v47 = vld [vmem:[%s1147_s1 + $0x3b0] sm:$0xff]  ;;  %v101_v48 = vld [vmem:[%s1147_s1 + $0x228] sm:$0xff]  ;;  %vm399_vm1 = vcmask 254976   ;;  %s629_s22 = smov 127  }
  0x33   :  { %v118_v49 = vld [vmem:[%s1147_s1 + $0x2b0] sm:$0xff]  ;;  %277 = vmatpush.msrb.mxu0 %v103_v35  ;;  %296 = vmatpush.msrb.mxu1 %v120_v36  ;;  %v177_v51 = vld.sshfl [vmem:[#allocation1 + $0x20] sm:$0xff pattern:$0x73625140]  ;;  %v149_v55 = vld [vmem:[%s1147_s1 + $0x3a8] sm:$0xff]  ;;  %s630_s23 = smov 1  }
  0x34   :  { %v179_v50 = vld.sshfl [vmem:[#allocation1 + $0x30] sm:$0xff pattern:$0x73625140]  ;;  %318 = vmatpush.msrb.mxu2 %v134_v39  ;;  %337 = vmatpush.msrb.mxu3 %v151_v40  ;;  %v180_v52 = vld.sshfl [vmem:[#allocation1 + $0x38] sm:$0xff pattern:$0x73625140] }
  0x35   :  { %v178_v53 = vld.sshfl [vmem:[#allocation1 + $0x28] sm:$0xff pattern:$0x73625140]  ;;  %278 = vmatpush.msrb.mxu0 %v102_v43  ;;  %297 = vmatpush.msrb.mxu1 %v119_v44  ;;  %v132_v54 = vld [vmem:[%s1147_s1 + $0x320] sm:$0xff]  ;;  %v131_v58 = vld [vmem:[%s1147_s1 + $0x318] sm:$0xff]  ;;  %vm372_vm2 = vcmask 1041408  }
  0x36   :  { %355 = vst [vmem:[#allocation1 + $0x20] ss:$4 sm:$0xff] %v350_v46  ;;  %319 = vmatpush.msrb.mxu2 %v133_v45  ;;  %338 = vmatpush.msrb.mxu3 %v150_v47  ;;  %v100_v56 = vld [vmem:[%s1147_s1 + $0x220] sm:$0xff]  ;;  %v117_v57 = vld [vmem:[%s1147_s1 + $0x2a8] sm:$0xff]  ;;  %v99_v60 = vld [vmem:[%s1147_s1 + $0x218] sm:$0xff]  ;;  %s532_s29 = sshll.u32 %s1153_s7, 4  ;;  %s533_s29 = int_to_ptr.hbm [resolvable:$true] %s532_s29 }
  0x37   :  { %279 = vmatpush.msrb.mxu0 %v101_v48  ;;  %298 = vmatpush.msrb.mxu1 %v118_v49  ;;  %v148_v59 = vld [vmem:[%s1147_s1 + $0x3a0] sm:$0xff]  ;;  %v130_v62 = vld [vmem:[%s1147_s1 + $0x310] sm:$0xff]  ;;  %v147_v63 = vld [vmem:[%s1147_s1 + $0x398] sm:$0xff]  ;;  %vm512_vm10 = vcmask 9216   ;;  %s635_s30 = smov [#allocation4]   ;;  %s543_s12 = sshll.u32 %s1154_s8, 4  ;;  %s544_s12 = int_to_ptr.hbm [resolvable:$true] %s543_s12 }
  0x38   :  { %320 = vmatpush.msrb.mxu2 %v132_v54  ;;  %339 = vmatpush.msrb.mxu3 %v149_v55  ;;  %v116_v61 = vld [vmem:[%s1147_s1 + $0x2a0] sm:$0xff]  ;;  %v98_v0 = vld [vmem:[%s1147_s1 + $0x210] sm:$0xff]  ;;  %v115_v1 = vld [vmem:[%s1147_s1 + $0x298] sm:$0xff]  ;;  %s541_s9 = sshll.u32 %s635_s30, 4  ;;  %vm523_vm11 = vcmask 25600   ;;  %s542_s9 = int_to_ptr.vmem [resolvable:$true] %s541_s9 }
  0x39   :  { %245 = vmatmul.f32.vlgmr.msra.gmra.mxu2 %v175_v37  ;;  %280 = vmatpush.msrb.mxu0 %v100_v56  ;;  %v129_v2 = vld [vmem:[%s1147_s1 + $0x308] sm:$0xff]  ;;  %v146_v3 = vld [vmem:[%s1147_s1 + $0x390] sm:$0xff]  ;;  %v128_v6 = vld [vmem:[%s1147_s1 + $0x300] sm:$0xff] }
  0x3a   :  { %299 = vmatpush.msrb.mxu1 %v117_v57  ;;  %321 = vmatpush.msrb.mxu2 %v131_v58  ;;  %v97_v4 = vld [vmem:[%s1147_s1 + $0x208] sm:$0xff]  ;;  %v114_v5 = vld [vmem:[%s1147_s1 + $0x290] sm:$0xff]  ;;  %v96_v8 = vld [vmem:[%s1147_s1 + $0x200] sm:$0xff] }
  0x3b   :  { %340 = vmatpush.msrb.mxu3 %v148_v59  ;;  %205 = vmatmul.f32.vlgmr.msra.gmra.mxu0 %v173_v38  ;;  %v145_v7 = vld [vmem:[%s1147_s1 + $0x388] sm:$0xff]  ;;  %v144_v10 = vld [vmem:[%s1147_s1 + $0x380] sm:$0xff]  ;;  %v359_v56 = vld.sshfl [vmem:[#allocation1 + $0x18] sm:$0xff pattern:$0x73625140] }
  0x3c   :  { %265 = vmatmul.f32.vlgmr.msra.gmra.mxu3 %v176_v41  ;;  %281 = vmatpush.msrb.mxu0 %v99_v60  ;;  %v113_v9 = vld [vmem:[%s1147_s1 + $0x288] sm:$0xff]  ;;  %v112_v11 = vld [vmem:[%s1147_s1 + $0x280] sm:$0xff]  ;;  %v378_v58 = vsel %vm372_vm2, %v359_v56, 0.0 }
  0x3d   :  { %300 = vmatpush.msrb.mxu1 %v116_v61  ;;  %322 = vmatpush.msrb.mxu2 %v130_v62  ;;  %v567_v12 = vld [vmem:[%s1148_s2] ss:$0 sm:$0xff]  ;;  %v361_v62 = vld.sshfl [vmem:[#allocation1 + $0x28] sm:$0xff pattern:$0x73625140] }
  0x3e   :  { %341 = vmatpush.msrb.mxu3 %v147_v63  ;;  %225 = vmatmul.f32.vlgmr.msra.gmra.mxu1 %v174_v42  ;;  %v1077_v26 = vld [vmem:[%s1150_s4] sm:$0x3] }
  0x3f   :  { %282 = vmatpush.msrb.mxu0 %v98_v0  ;;  %301 = vmatpush.msrb.mxu1 %v115_v1  ;;  %v407_v30 = vperm.slane %v1077_v26, 1  ;;  %v397_v34 = vperm.slane %v1077_v26, 0  ;;  %v568_v37 = vld [vmem:[%s1151_s5] ss:$0 sm:$0xff]  ;;  %v382_v0 = vsel %vm372_vm2, %v361_v62, 0.0 }
  0x40   :  { %323 = vmatpush.msrb.mxu2 %v129_v2  ;;  %342 = vmatpush.msrb.mxu3 %v146_v3  ;;  %v356_v49 = vld.sshfl [vmem:[#allocation1] sm:$0xff pattern:$0x73625140]  ;;  %v362_v1 = vld.sshfl [vmem:[#allocation1 + $0x30] sm:$0xff pattern:$0x73625140] }
  0x41   :  { %283 = vmatpush.msrb.mxu0 %v97_v4  ;;  %302 = vmatpush.msrb.mxu1 %v114_v5  ;;  %v360_v59 = vld.sshfl [vmem:[#allocation1 + $0x20] sm:$0xff pattern:$0x73625140]  ;;  %v384_v3 = vsel %vm372_vm2, %v362_v1, 0.0 }
  0x42   :  { %324 = vmatpush.msrb.mxu2 %v128_v6  ;;  %343 = vmatpush.msrb.mxu3 %v145_v7  ;;  %v380_v61 = vsel %vm372_vm2, %v360_v59, 0.0  ;;  %v363_v4 = vld.sshfl [vmem:[#allocation1 + $0x38] sm:$0xff pattern:$0x73625140] }
  0x43   :  { %325 = vmatmul.f32.vlgmr.msrb.gmra.mxu2 %v179_v50  ;;  %284 = vmatpush.msrb.mxu0 %v96_v8  ;;  %v357_v50 = vld.sshfl [vmem:[#allocation1 + $0x8] sm:$0xff pattern:$0x73625140]  ;;  %v386_v6 = vsel %vm372_vm2, %v363_v4, 0.0  ;;  %v634_v4 = vmov -1.0  }
  0x44   :  { %303 = vmatpush.msrb.mxu1 %v113_v9  ;;  %344 = vmatpush.msrb.mxu3 %v144_v10 }
  0x45   :  { %285 = vmatmul.f32.vlgmr.msrb.gmra.mxu0 %v177_v51  ;;  %345 = vmatmul.f32.vlgmr.msrb.gmra.mxu3 %v180_v52  ;;  %v373_v51 = vsel %vm372_vm2, %v356_v49, 0.0  ;;  %v374_v52 = vsel %vm372_vm2, %v357_v50, 0.0 }
  0x46   :  { %304 = vmatpush.msrb.mxu1 %v112_v11  ;;  %v375_v54 = vadd.f32 %v374_v52, %v373_v51  ;;  %v499_v52 = vlaneseq }
  0x47   :  { %305 = vmatmul.f32.vlgmr.msrb.gmra.mxu1 %v178_v53  ;;  %v358_v53 = vld.sshfl [vmem:[#allocation1 + $0x10] sm:$0xff pattern:$0x73625140] }
  0x48   :  { %v376_v55 = vsel %vm372_vm2, %v358_v53, 0.0  ;;  %v500_v53 = vand.u32 127, %v499_v52 }
  0x49   :  { %v377_v57 = vadd.f32 %v376_v55, %v375_v54 }
  0x4a   :  { %vm501_vm7 = vcmp.eq.s32.totalorder %v500_v53, 0  ;;  %vm514_vm8 = vcmp.eq.s32.totalorder %v500_v53, 3 }
  0x4b   :  { %v379_v60 = vadd.f32 %v378_v58, %v377_v57  ;;  %vm1133_vm9 = vmor %vm501_vm7, %vm514_vm8 }
  0x4d   :  { %v381_v63 = vadd.f32 %v380_v61, %v379_v60 }
  0x4f   :  { %v383_v2 = vadd.f32 %v382_v0, %v381_v63 }
  0x51   :  { %v385_v5 = vadd.f32 %v384_v3, %v383_v2 }
  0x53   :  { %v387_v7 = vadd.f32 %v386_v6, %v385_v5  ;;  %v516_v5 = vsel %vm1133_vm9, 1.0, %v634_v4 }
  0xb8   :  { %v206_v13 = vpop.f32.mrf.mxu0 }
  0xb9   :  { %v207_v14 = vadd.f32 %v567_v12, %v206_v13 }
  0xbb   :  { %v226_v15 = vpop.f32.mrf.mxu1 }
  0xbc   :  { %v227_v16 = vadd.f32 %v226_v15, %v207_v14  ;;  %v246_v17 = vpop.f32.mrf.mxu2 }
  0xbe   :  { %v247_v18 = vadd.f32 %v246_v17, %v227_v16 }
  0xbf   :  { %v266_v19 = vpop.f32.mrf.mxu3 }
  0xc0   :  { %v267_v20 = vadd.f32 %v266_v19, %v247_v18 }
  0xc2   :  { %v286_v21 = vpop.f32.mrf.mxu0 }
  0xc3   :  { %v287_v22 = vadd.f32 %v286_v21, %v267_v20 }
  0xc4   :  { %v306_v23 = vpop.f32.mrf.mxu1 }
  0xc5   :  { %v307_v24 = vadd.f32 %v306_v23, %v287_v22  ;;  %v631_v23 = vmov 0  }
  0xc6   :  { %v326_v25 = vpop.f32.mrf.mxu2  ;;  %565 = vset.pattern.permute.xlu1 %v631_v23  ;;  %564 = vset.pattern.permute.xlu0 %v631_v23 }
  0xc7   :  { %v327_v27 = vadd.f32 %v326_v25, %v307_v24  ;;  %v413_v24 = vmul.f32 %v1077_v26, %v1077_v26  ;;  %v569_v25 = vld [vmem:[%s1149_s3] ss:$0 sm:$0xff] }
  0xc8   :  { %v346_v28 = vpop.f32.mrf.mxu3 }
  0xc9   :  { %v1079_v29 = vadd.f32 %v346_v28, %v327_v27  ;;  %v414_v28 = vperm.slane %v413_v24, 0 }
  0xcb   :  { %vm394_vm0 = vcmp.gt.f32.partialorder %v1079_v29, 0.0 }
  0xcc   :  { %v1086_v31 = vsel %vm394_vm0, %v1079_v29, 0.0 }
  0xcd   :  { %v408_v32 = vmul.f32 %v407_v30, %v1086_v31  ;;  %v398_v35 = vmul.f32 %v397_v34, %v1086_v31 }
  0xcf   :  { %v409_v33 = vsel %vm399_vm1, %v408_v32, 0.0  ;;  %v400_v36 = vsel %vm399_vm1, %v398_v35, 0.0  ;;  %v433_v32 = vmul.f32 %v1086_v31, %v1086_v31 }
  0xd0   :  { %410 = vadd.xlane.f32.xlu0 %v409_v33 }
  0xd8   :  { %401 = vadd.xlane.f32.xlu0 %v400_v36 }
 0x143   :  { %v411_v38 = vpop.xlane.xlu0 %410 }
 0x144   :  { %v412_v39 = vadd.f32 %v568_v37, %v411_v38  ;;  %v428_v38 = vperm.slane %v413_v24, 1 }
 0x146   :  { %445 = vrot.lane.b32.xlu1 %v412_v39, %s629_s22 }
 0x14b   :  { %v402_v40 = vpop.xlane.xlu0 %401 }
 0x14c   :  { %v406_v41 = vadd.f32 %v568_v37, %v402_v40 }
 0x1b8   :  { %v446_v42 = vpop.permute.xlu1 %445 }
 0x1b9   :  { %v448_v43 = vmax.f32 %v406_v41, %v446_v42 }
 0x1bb   :  { %v449_v44 = vsub.f32 %v406_v41, %v448_v43  ;;  %453 = vrot.lane.b32.xlu1 %v448_v43, %s630_s23 }
 0x1bd   :  { %v450_v8 = vmul.f32 1.442695, %v449_v44 }
 0x22d   :  { %v454_v45 = vpop.permute.xlu1 %453 }
 0x22e   :  { %v456_v46 = vsub.f32 %v412_v39, %v454_v45  ;;  %v420_v39 = vrot.slane %v1077_v26, 1 }
 0x230   :  { %v457_v47 = vmul.f32 1.442695, %v456_v46  ;;  %v422_v41 = vmul.f32 %v420_v39, %v1077_v26  ;;  %v632_v46 = vmov 1   ;;  %v570_v26 = vld [vmem:[%s1152_s6] ss:$0 sm:$0xff]  ;;  %s633_s6 = smov [#allocation2]  }
 0x231   :  { %566 = vset.pattern.permute.xlu2 %v632_v46  ;;  %s530_s26 = sshll.u32 %s633_s6, 4  ;;  %s531_s26 = int_to_ptr.vmem [resolvable:$true] %s530_s26 }
 0x232   :  { %571 = vpow2.f32 %v457_v47  ;;  %v423_v31 = vperm.slane %v422_v41, 0 }
 0x233   :  { %573 = vpow2.f32 %v450_v8 }
 0x238   :  { %v1098_v48 = vpop.eup %571 }
 0x239   :  { %460 = vrot.lane.b32.xlu2 %v1098_v48, %s629_s22  ;;  %v574_v9 = vpop.eup %573 }
 0x262   :  { %388 = vadd.xlane.f32.xlu2 %v387_v7 }
 0x293   :  { %v461_v10 = vpop.permute.xlu2 %460 }
 0x294   :  { %v463_v11 = vadd.f32 %v574_v9, %v461_v10 }
 0x296   :  { %575 = vrcp.f32 %v463_v11  ;;  %v475_v15 = vand.u32 2147483648, %v463_v11  ;;  %v473_v17 = vand.u32 2147483647, %v463_v11  ;;  %vm469_vm4 = vweird.f32 %v463_v11 }
 0x298   :  { %v476_v19 = vor.u32 1.1754944e-38, %v475_v15  ;;  %vm474_vm6 = vcmp.eq.f32.partialorder %v473_v17, 8.507059e+37 }
 0x29c   :  { %v576_v12 = vpop.eup %575 }
 0x29d   :  { %v465_v13 = vmul.f32 %v576_v12, %v463_v11  ;;  %vm470_vm3 = vweird.f32 %v576_v12 }
 0x29e   :  { %vm471_vm5 = vmor %vm469_vm4, %vm470_vm3 }
 0x29f   :  { %v466_v14 = vsub.f32 1.0, %v465_v13 }
 0x2a1   :  { %v467_v16 = vmul.f32 %v576_v12, %v466_v14 }
 0x2a3   :  { %v468_v18 = vadd.f32 %v576_v12, %v467_v16 }
 0x2a5   :  { %v472_v20 = vsel %vm471_vm5, %v576_v12, %v468_v18 }
 0x2a6   :  { %v477_v21 = vsel %vm474_vm6, %v476_v19, %v472_v20 }
 0x2a7   :  { %481 = vrot.lane.b32.xlu1 %v477_v21, %s630_s23  ;;  %v479_v22 = vmul.f32 %v574_v9, %v477_v21 }
 0x2d5   :  { %v389_v27 = vpop.xlane.xlu2 %388 }
 0x2d6   :  { %v393_v30 = vmul.f32 %v569_v25, %v389_v27 }
 0x2d8   :  { %v396_v33 = vsel %vm394_vm0, %v393_v30, 0.0 }
 0x2d9   :  { %v434_v34 = vadd.f32 %v433_v32, %v396_v33  ;;  %v415_v35 = vmul.f32 %v414_v28, %v396_v33  ;;  %v429_v40 = vmul.f32 %v428_v38, %v396_v33  ;;  %v424_v29 = vmul.f32 %v423_v31, %v396_v33 }
 0x2db   :  { %v435_v36 = vsel %vm399_vm1, %v434_v34, 0.0  ;;  %v416_v37 = vsel %vm399_vm1, %v415_v35, 0.0  ;;  %v430_v42 = vsel %vm399_vm1, %v429_v40, 0.0  ;;  %v425_v43 = vsel %vm399_vm1, %v424_v29, 0.0 }
 0x2dc   :  { %436 = vadd.xlane.f32.xlu0 %v435_v36  ;;  %417 = vadd.xlane.f32.xlu1 %v416_v37 }
 0x2e4   :  { %431 = vadd.xlane.f32.xlu0 %v430_v42 }
 0x2ec   :  { %426 = vadd.xlane.f32.xlu0 %v425_v43 }
 0x2f5   :  { %504 = vperm.xlu1 %565, %v479_v22  }
 0x319   :  { %v482_v44 = vpop.permute.xlu1 %481 }
 0x31a   :  { %v484_v45 = vmul.f32 %v1098_v48, %v482_v44 }
 0x31c   :  { %486 = vrot.lane.b32.xlu0 %v484_v45, %s629_s22 }
 0x34f   :  { %v437_v47 = vpop.xlane.xlu0 %436  ;;  %v418_v57 = vpop.xlane.xlu1 %417 }
 0x350   :  { %v441_v49 = vmul.f32 %v570_v26, %v437_v47 }
 0x352   :  { %v442_v58 = vadd.f32 %v441_v49, %v418_v57 }
 0x357   :  { %v432_v50 = vpop.xlane.xlu0 %431 }
 0x358   :  { %v443_v51 = vadd.f32 %v441_v49, %v432_v50 }
 0x35a   :  { %494 = vrot.lane.b32.xlu2 %v443_v51, %s629_s22 }
 0x35f   :  { %v427_v54 = vpop.xlane.xlu0 %426 }
 0x360   :  { %v491_v56 = vmul.f32 2.0, %v427_v54 }
 0x362   :  { %508 = vperm.xlu2 %566, %v484_v45   ;;  %v492_v60 = vsub.f32 %v442_v58, %v491_v56 }
 0x367   :  { %v505_v1 = vpop.permute.xlu1 %504 }
 0x38e   :  { %v487_v55 = vpop.permute.xlu0 %486 }
 0x38f   :  { %v489_v59 = vmul.f32 %v487_v55, %v479_v22 }
 0x391   :  { %v490_v62 = vmul.f32 %v489_v59, %v489_v59 }
 0x3b4   :  { %v495_v61 = vpop.permute.xlu2 %494 }
 0x3b5   :  { %v497_v63 = vadd.f32 %v495_v61, %v492_v60 }
 0x3b7   :  { %v498_v0 = vmul.f32 %v497_v63, %v490_v62 }
 0x3b9   :  { %519 = vperm.xlu0 %564, %v498_v0  }
 0x3bc   :  { %v509_v2 = vpop.permute.xlu2 %508 }
 0x3bd   :  { %v511_v3 = vsel %vm501_vm7, %v505_v1, %v509_v2 }
 0x3be   :  { %513 = vst.msk [vmem:[#allocation2] sm:$0x3] %vm512_vm10, %v511_v3 }
 0x3bf   :  { %535 = dma.vmem_to_hbm [thread:$0]  %s531_s26, 32, %s533_s29, [#allocation3]  }
 0x42b   :  { %v520_v6 = vpop.permute.xlu0 %519 }
 0x42c   :  { %v522_v7 = vmul.f32 %v520_v6, %v516_v5 }
 0x42e   :  { %524 = vst.msk [vmem:[#allocation4] sm:$0x3] %vm523_vm11, %v522_v7 }
 0x42f   :  { %546 = dma.vmem_to_hbm [thread:$0]  %s542_s9, 32, %s544_s12, [#allocation5]  }
 0x430   :  { %625 = dma.done.wait [#allocation3], 32  }
 0x431   :  { %626 = vsyncadd [#allocation3], 4294967264 }
 0x432   :  { %627 = dma.done.wait [#allocation5], 32  }
 0x433   :  { %628 = vsyncadd [#allocation5], 4294967264 }
 0x434   :  { %555 = vsyncpa [#allocation3], 1 }
 0x435   :  { %556 = vsyncpa [#allocation5], 1 }

</bundles_post_ra>
